<compile_context>
chip_gen: v6e
topology: v6e:2x2x1
jax: 0.10.0
libtpu: 0.0.40
codegen_flags: <defaults>
</compile_context>

<pallas_src>
import functools

import jax
import jax.numpy as jnp
from jax import lax
from jax.experimental import pallas as pl
from jax.experimental.pallas import tpu as pltpu

# ----------------------------- constants ------------------------------------

GATE_PAD = 128       # all 3 GRU gates (3*H) packed into ONE 128-lane block
CAP_PAD = 128        # caption vocab padded to one lane block (pad logits -> -1e30)
TERM_PAD = 128       # term-class logits padded to one lane block
MLP_PAD = 128        # img->term MLP hidden padded to one lane block
IDS_PAD = 128        # generated-ids output row padded (lane-dense store)
NEG_INF = -1e30

SMEM_SPEC = pl.BlockSpec(memory_space=pltpu.MemorySpace.SMEM)
VMEM_SPEC = pl.BlockSpec(memory_space=pltpu.MemorySpace.VMEM)


# ----------------------------- Pallas kernels -------------------------------

def _img_term_kernel(x_ref, w1_ref, b1_ref, w2_ref, b2_ref, o_ref):
    # x: (C, H*W) lane-dense.  Global average pool = lane reduction (XLU); the
    # first MLP layer is a (C,1)-broadcast multiply + sublane reduction (C=4 is
    # far too narrow to need the MXU); the second layer is one MXU matmul.
    hw = x_ref.shape[1]
    pooled = jnp.sum(x_ref[...], axis=1, keepdims=True) * (1.0 / hw)          # (C, 1)
    hid = jnp.sum(pooled * w1_ref[...], axis=0, keepdims=True) + b1_ref[...]  # (1, MLP_PAD)
    hid = jnp.maximum(hid, 0.0)
    o_ref[...] = (jnp.dot(hid, w2_ref[...], preferred_element_type=jnp.float32)
                  + b2_ref[...])


def _img_term_pallas(x2d, w1, b1, w2, b2):
    return pl.pallas_call(
        _img_term_kernel,
        out_shape=jax.ShapeDtypeStruct((1, w2.shape[1]), jnp.float32),
        in_specs=[VMEM_SPEC] * 5,
        out_specs=VMEM_SPEC,
    )(x2d, w1, b1, w2, b2)


def _langgen_kernel(sc_ref, gx_terms_ref, gx_start_ref, w_ref, b_ref, gen_ids_ref,
                    *, h_real, hp, max_decode_len, cap_pad, ids_pad):
    # sc_ref (SMEM int32): [0] = real term length, [1] = <end> token id
    # w_ref rows:  [0,hp)=enc_wh  [hp,2hp)=dec_wh  [2hp,3hp)=w_out
    #              [3hp,3hp+cap_pad)=dec_gx table (cap_emb@dec_wx + dec_bx)
    # b_ref rows:  0=enc_bh  1=dec_bh  2=b_out (pad cols = -1e30)
    tlen = sc_ref[0]
    end_tok = sc_ref[1]
    g3 = 3 * h_real

    # tiny (1,128) biases: 1 vreg each -> safe to hoist; big weights stay in VMEM
    # and are streamed per matmul via static pl.ds slices of the slab ref.
    enc_bh = b_ref[pl.ds(0, 1), :]
    dec_bh = b_ref[pl.ds(1, 1), :]
    b_out = b_ref[pl.ds(2, 1), :]

    zpad = jnp.zeros((1, hp - h_real), jnp.float32)          # hoisted constant
    vocab_iota = lax.broadcasted_iota(jnp.int32, (1, cap_pad), 1)
    ids_iota = lax.broadcasted_iota(jnp.int32, (1, ids_pad), 1)

    def gru_combine(gx, gh, h):
        # Packed-gate PyTorch GRUCell: lanes [0,H)=r, [H,2H)=z, [2H,3H)=n.
        # (gh already contains the h-side bias, so n = tanh(gx_n + r*(Whn h + bhn)).)
        pre = gx + gh
        r = jax.nn.sigmoid(pre[:, 0:h_real])
        z = jax.nn.sigmoid(pre[:, h_real:2 * h_real])
        n = jnp.tanh(gx[:, 2 * h_real:g3] + r * gh[:, 2 * h_real:g3])
        h_new = (1.0 - z) * n + z * h[:, 0:h_real]
        return jnp.concatenate([h_new, zpad], axis=1)        # keep pad lanes exactly 0

    # ------------------------------ encoder --------------------------------
    # Input-side gates were pre-folded into the embedding table, so each step is
    # ONE (1,128)@(128,128) MXU pass + gate math.  Dynamic trip count: only the
    # real `tlen` steps run (typically ~8 of the 20 padded positions).
    def enc_step(t, h):
        gx = gx_terms_ref[pl.ds(t, 1), :]
        gh = (jnp.dot(h, w_ref[pl.ds(0, hp), :], preferred_element_type=jnp.float32)
              + enc_bh)
        return gru_combine(gx, gh, h)

    h = lax.fori_loop(0, tlen, enc_step, jnp.zeros((1, hp), jnp.float32))

    # --------------------------- greedy decoder ----------------------------
    # 3 MXU passes per step: recurrence, output projection, next-gate lookup
    # (one-hot against the folded cap_emb@dec_wx table).
    def dec_step(step, carry):
        gx, h, done, ids_row = carry                         # done: (1,1) int32 {0,1}
        gh = (jnp.dot(h, w_ref[pl.ds(hp, hp), :], preferred_element_type=jnp.float32)
              + dec_bh)
        h_new = gru_combine(gx, gh, h)
        logits = (jnp.dot(h_new, w_ref[pl.ds(2 * hp, hp), :],
                          preferred_element_type=jnp.float32) + b_out)
        # in-kernel argmax (first index achieving the max), vector form only
        m = jnp.max(logits, axis=-1, keepdims=True)
        tok = jnp.min(jnp.where(logits == m, vocab_iota, cap_pad),
                      axis=-1, keepdims=True)                # (1, 1) int32
        is_end = (tok == end_tok).astype(jnp.int32)
        emit = (1 - done) * (1 - is_end)
        ids_row = jnp.where(jnp.logical_and(ids_iota == step, emit > 0), tok, ids_row)
        onehot = (vocab_iota == tok).astype(jnp.float32)
        gx_next = jnp.dot(onehot, w_ref[pl.ds(3 * hp, cap_pad), :],
                          preferred_element_type=jnp.float32)
        done_f = done.astype(jnp.float32)
        gx = done_f * gx + (1.0 - done_f) * gx_next
        h = done_f * h + (1.0 - done_f) * h_new
        done = jnp.maximum(done, is_end)
        return gx, h, done, ids_row

    ids0 = jnp.full((1, ids_pad), -1, jnp.int32)
    carry0 = (gx_start_ref[...], h, jnp.zeros((1, 1), jnp.int32), ids0)
    # TODO(synk): a true data-dependent early-exit on <end> needs a scalar
    # while-loop condition (vreg->sreg extract); kept as a masked, fully-unrolled
    # fixed-trip loop for robustness (unroll lets the scheduler overlap EUP/XLU/MXU).
    _, _, _, ids_row = lax.fori_loop(0, max_decode_len, dec_step, carry0, unroll=True)
    gen_ids_ref[...] = ids_row                               # single lane-dense store


def _langgen_pallas(scalars, gx_terms, gx_start, w_slab, b_slab,
                    *, h_real, max_decode_len):
    hp = w_slab.shape[1]
    kernel = functools.partial(_langgen_kernel, h_real=h_real, hp=hp,
                               max_decode_len=max_decode_len,
                               cap_pad=CAP_PAD, ids_pad=IDS_PAD)
    return pl.pallas_call(
        kernel,
        out_shape=jax.ShapeDtypeStruct((1, IDS_PAD), jnp.int32),
        in_specs=[SMEM_SPEC] + [VMEM_SPEC] * 4,
        out_specs=VMEM_SPEC,
    )(scalars, gx_terms, gx_start, w_slab, b_slab)


# ----------------------------- glue / modules --------------------------------

def extract_caption_len(captions):
    captions_lens = captions[:, -1]
    captions = captions[:, :-1]
    return captions, captions_lens


class Vocab:
    SPECIALS = ["<pad>", "<start>", "<end>", "<unk>"]

    def __init__(self, words):
        self.itos = list(self.SPECIALS) + list(words)
        self.stoi = {w: i for i, w in enumerate(self.itos)}

    def __len__(self):
        return len(self.itos)

    def prepare_for_training(self, tokens, max_caption_len=20, terms=True):
        ids = ([self.stoi["<start>"]]
               + [self.stoi.get(t, self.stoi["<unk>"]) for t in tokens]
               + [self.stoi["<end>"]])
        ids = ids[:max_caption_len]
        length = len(ids)
        ids = ids + [self.stoi["<pad>"]] * (max_caption_len - len(ids))
        return ids + [length]


class ImgToTerm:
    """Image -> term-word list.  Fused Pallas kernel: avg-pool + 2-layer MLP."""

    def __init__(self, key, in_channels, hidden, n_term_classes, k_terms=6):
        assert hidden <= MLP_PAD and n_term_classes <= TERM_PAD
        assert k_terms <= n_term_classes
        k1, k2, k3, k4 = jax.random.split(key, 4)
        w1 = 0.2 * jax.random.normal(k1, (in_channels, hidden), jnp.float32)
        b1 = 0.2 * jax.random.normal(k2, (1, hidden), jnp.float32)
        w2 = 0.2 * jax.random.normal(k3, (hidden, n_term_classes), jnp.float32)
        b2 = 0.2 * jax.random.normal(k4, (1, n_term_classes), jnp.float32)
        self.k_terms = k_terms
        self.n_term_classes = n_term_classes
        # lane-dense padded weights (padded logit columns biased to -1e30)
        self.w1 = jnp.pad(w1, ((0, 0), (0, MLP_PAD - hidden)))
        self.b1 = jnp.pad(b1, ((0, 0), (0, MLP_PAD - hidden)))
        self.w2 = jnp.pad(w2, ((0, MLP_PAD - hidden), (0, TERM_PAD - n_term_classes)))
        self.b2 = jnp.pad(b2, ((0, 0), (0, TERM_PAD - n_term_classes)),
                          constant_values=NEG_INF)

        def _run(img):
            c = img.shape[1]
            # (1,C,H,W) -> (C, H*W): contiguous reshape, NO transpose / relayout
            x2d = img[0].astype(jnp.float32).reshape(c, -1)
            logits_pad = _img_term_pallas(x2d, self.w1, self.b1, self.w2, self.b2)
            _, top_idx = lax.top_k(logits_pad[0], self.k_terms)
            return logits_pad, top_idx

        self._run = jax.jit(_run)

    def __call__(self, img, mmap):
        logits_pad, top_idx = self._run(img)
        idxs = jax.device_get(top_idx)            # single tiny device->host transfer
        # TODO(synk): mmap/word-list lookup is host-side string bookkeeping; no Pallas equivalent.
        words = [mmap[int(i)] for i in idxs]
        logits = logits_pad[:, :self.n_term_classes]
        return ["<t_start>"] + words + ["<t_end>"], logits


class LanguageGenerator:
    """GRU encoder over term ids -> greedy GRU decoder, fully fused in ONE Pallas kernel."""

    def __init__(self, key, term_vocab_size, cap_vocab_size, emb=32, hidden=32,
                 max_decode_len=20):
        assert 3 * hidden <= GATE_PAD, "3*hidden must fit one 128-lane gate block"
        assert cap_vocab_size <= CAP_PAD, "caption vocab must fit one lane block"
        assert max_decode_len <= IDS_PAD
        ks = jax.random.split(key, 12)
        s = 0.2
        self.H = hidden
        self.Hp = GATE_PAD
        self.max_decode_len = max_decode_len

        term_emb = s * jax.random.normal(ks[0], (term_vocab_size, emb), jnp.float32)
        cap_emb = s * jax.random.normal(ks[1], (cap_vocab_size, emb), jnp.float32)
        # real-size GRU / projection weights (PyTorch GRUCell gate order r,z,n)
        enc_wx = s * jax.random.normal(ks[2], (emb, 3 * hidden), jnp.float32)
        enc_wh = s * jax.random.normal(ks[3], (hidden, 3 * hidden), jnp.float32)
        enc_bx = s * jax.random.normal(ks[4], (1, 3 * hidden), jnp.float32)
        enc_bh = s * jax.random.normal(ks[5], (1, 3 * hidden), jnp.float32)
        dec_wx = s * jax.random.normal(ks[6], (emb, 3 * hidden), jnp.float32)
        dec_wh = s * jax.random.normal(ks[7], (hidden, 3 * hidden), jnp.float32)
        dec_bx = s * jax.random.normal(ks[8], (1, 3 * hidden), jnp.float32)
        dec_bh = s * jax.random.normal(ks[9], (1, 3 * hidden), jnp.float32)
        w_out = s * jax.random.normal(ks[10], (hidden, cap_vocab_size), jnp.float32)
        b_out = s * jax.random.normal(ks[11], (1, cap_vocab_size), jnp.float32)

        hp = self.Hp
        g3 = 3 * hidden

        # Fold embeddings + input-side gate weights/biases into lookup tables so
        # the kernel never multiplies by enc_wx / dec_wx / cap_emb.
        enc_gx_tab = term_emb @ enc_wx + enc_bx                 # (term_vocab, 3H)
        dec_gx_tab = cap_emb @ dec_wx + dec_bx                  # (cap_vocab, 3H)
        self.enc_gx_tab = jnp.pad(enc_gx_tab, ((0, 0), (0, hp - g3)))
        self.dec_gx_tab = jnp.pad(dec_gx_tab,
                                  ((0, CAP_PAD - cap_vocab_size), (0, hp - g3)))

        # Pack all 3 gates into one 128-lane block; padded rows/cols stay exactly 0.
        enc_wh_p = jnp.pad(enc_wh, ((0, hp - hidden), (0, hp - g3)))
        dec_wh_p = jnp.pad(dec_wh, ((0, hp - hidden), (0, hp - g3)))
        w_out_p = jnp.pad(w_out, ((0, hp - hidden), (0, CAP_PAD - cap_vocab_size)))
        # weight slab rows: [0,128)=enc_wh  [128,256)=dec_wh  [256,384)=w_out
        #                   [384,512)=dec_gx table
        self.w_slab = jnp.concatenate([enc_wh_p, dec_wh_p, w_out_p, self.dec_gx_tab],
                                      axis=0)                    # (512, 128)

        enc_bh_p = jnp.pad(enc_bh, ((0, 0), (0, hp - g3)))
        dec_bh_p = jnp.pad(dec_bh, ((0, 0), (0, hp - g3)))
        b_out_p = jnp.pad(b_out, ((0, 0), (0, CAP_PAD - cap_vocab_size)),
                          constant_values=NEG_INF)
        self.b_slab = jnp.concatenate(
            [enc_bh_p, dec_bh_p, b_out_p, jnp.zeros((5, hp), jnp.float32)], axis=0)  # (8,128)

        h_real = hidden
        max_dec = max_decode_len

        def _generate(terms_row, tlen, start_end):
            # XLA-side glue (no host syncs): table gathers + SMEM scalar packing
            gx_terms = jnp.take(self.enc_gx_tab, terms_row, axis=0)          # (T_max, 128)
            gx_start = jnp.take(self.dec_gx_tab, start_end[0:1], axis=0)     # (1, 128)
            scalars = jnp.concatenate([tlen.astype(jnp.int32),
                                       start_end[1:2].astype(jnp.int32)])    # [tlen, <end>]
            return _langgen_pallas(scalars, gx_terms, gx_start,
                                   self.w_slab, self.b_slab,
                                   h_real=h_real, max_decode_len=max_dec)

        self._generate = jax.jit(_generate)

    def forward_eval(self, terms, tlens, cmap):
        start_end = jnp.asarray([cmap.stoi["<start>"], cmap.stoi["<end>"]],
                                dtype=jnp.int32)
        gen_row = self._generate(terms[0], tlens, start_end)    # (1, IDS_PAD), -1 padded
        ids_host = jax.device_get(gen_row)[0]                   # ONE device->host transfer
        gen_ids = []
        for t in ids_host[: self.max_decode_len]:
            if int(t) < 0:                                      # -1 sentinel => stop
                break
            gen_ids.append(int(t))
        gen_words = [cmap.itos[i] for i in gen_ids]
        return gen_words, jnp.asarray(gen_ids, dtype=jnp.int32)


class SemStyle:
    def __init__(self, img_to_term, language_generator, mmap, tmap, cmap):
        self.img_to_term = img_to_term
        self.language_generator = language_generator
        self.mmap = mmap
        self.tmap = tmap
        self.cmap = cmap

    def forward(self, img, style=None):
        terms, _ = self.img_to_term(img, self.mmap)
        terms = terms[1:-1]
        if not terms:
            return (terms, [], [])
        if style:
            terms = terms + [style]
        orig_terms = list(terms)
        term_ids = self.tmap.prepare_for_training(terms, max_caption_len=20, terms=True)
        term_arr = jnp.asarray(term_ids, dtype=jnp.int32)[None, :]   # (1, 21)
        term_arr, tlens = extract_caption_len(term_arr)              # (1, 20), (1,)
        return (orig_terms,
                *self.language_generator.forward_eval(term_arr, tlens, self.cmap))


# --------------------------------- main --------------------------------------

if __name__ == "__main__":
    key = jax.random.PRNGKey(0)
    k_img, k_i2t, k_lg = jax.random.split(key, 3)

    term_words = ["dog", "cat", "park", "ball", "tree", "sky", "water", "grass",
                  "man", "woman", "car", "road", "beach", "sun", "bird", "boat"]
    cap_words = ["a", "the", "dog", "cat", "runs", "sits", "in", "on", "park",
                 "grass", "with", "ball", "man", "woman", "near", "tree", "sky",
                 "water", "walks", "plays"]

    mmap = list(term_words)                  # term-class index -> word
    tmap = Vocab(term_words)                 # term vocab (with specials)
    cmap = Vocab(cap_words)                  # caption vocab (with specials)

    img_to_term = ImgToTerm(k_i2t, in_channels=4, hidden=32,
                            n_term_classes=len(term_words), k_terms=6)
    language_generator = LanguageGenerator(k_lg, term_vocab_size=len(tmap),
                                           cap_vocab_size=len(cmap),
                                           emb=32, hidden=32)

    model = SemStyle(img_to_term, language_generator, mmap, tmap, cmap)

    img = jax.random.normal(k_img, (1, 4, 16, 16), jnp.float32)  # layout: NCHW

    orig_terms, gen_words, gen_ids = model.forward(img)
    jax.block_until_ready(gen_ids)
    print("KERNEL_OK")
</pallas_src>

<mosaic_0001>
module attributes {stable_mosaic.version = 11 : i64} {
  func.func @_img_term_kernel(%arg0: memref<4x256xf32, #tpu.memory_space<vmem>>, %arg1: memref<4x128xf32, #tpu.memory_space<vmem>>, %arg2: memref<1x128xf32, #tpu.memory_space<vmem>>, %arg3: memref<128x128xf32, #tpu.memory_space<vmem>>, %arg4: memref<1x128xf32, #tpu.memory_space<vmem>>, %arg5: memref<1x128xf32, #tpu.memory_space<vmem>>) attributes {dimension_semantics = [], scalar_prefetch = 0 : i64, scratch_operands = 0 : i64, tpu.core_type = #tpu.core_type<tc>} {
    %c0 = arith.constant 0 : index
    %c0_0 = arith.constant 0 : index
    %0 = vector.load %arg0[%c0, %c0_0] : memref<4x256xf32, #tpu.memory_space<vmem>>, vector<4x256xf32>
    %cst = arith.constant dense<0.000000e+00> : vector<4xf32>
    %1 = vector.multi_reduction <add>, %0, %cst [1] : vector<4x256xf32> to vector<4xf32>
    %2 = vector.shape_cast %1 : vector<4xf32> to vector<4x1xf32>
    %cst_1 = arith.constant 3.906250e-03 : f32
    %3 = vector.broadcast %cst_1 : f32 to vector<4x1xf32>
    %4 = arith.mulf %2, %3 : vector<4x1xf32>
    %c0_2 = arith.constant 0 : index
    %c0_3 = arith.constant 0 : index
    %5 = vector.load %arg1[%c0_2, %c0_3] : memref<4x128xf32, #tpu.memory_space<vmem>>, vector<4x128xf32>
    %6 = vector.broadcast %4 : vector<4x1xf32> to vector<4x128xf32>
    %7 = arith.mulf %6, %5 : vector<4x128xf32>
    %cst_4 = arith.constant dense<0.000000e+00> : vector<128xf32>
    %8 = vector.multi_reduction <add>, %7, %cst_4 [0] : vector<4x128xf32> to vector<128xf32>
    %9 = vector.shape_cast %8 : vector<128xf32> to vector<1x128xf32>
    %c0_5 = arith.constant 0 : index
    %c0_6 = arith.constant 0 : index
    %10 = vector.load %arg2[%c0_5, %c0_6] : memref<1x128xf32, #tpu.memory_space<vmem>>, vector<1x128xf32>
    %11 = arith.addf %9, %10 : vector<1x128xf32>
    %cst_7 = arith.constant 0.000000e+00 : f32
    %12 = vector.broadcast %cst_7 : f32 to vector<1x128xf32>
    %13 = arith.maximumf %11, %12 : vector<1x128xf32>
    %c0_8 = arith.constant 0 : index
    %c0_9 = arith.constant 0 : index
    %14 = vector.load %arg3[%c0_8, %c0_9] : memref<128x128xf32, #tpu.memory_space<vmem>>, vector<128x128xf32>
    %cst_10 = arith.constant dense<0.000000e+00> : vector<1x128xf32>
    %15 = tpu.matmul %13, %14, %cst_10 {dimension_numbers = #tpu.dot_dimension_numbers<[1], [0], [0], [1], [0, 0, 1, 1], [], []>} : vector<1x128xf32>, vector<128x128xf32>, vector<1x128xf32> -> vector<1x128xf32>
    %c0_11 = arith.constant 0 : index
    %c0_12 = arith.constant 0 : index
    %16 = vector.load %arg4[%c0_11, %c0_12] : memref<1x128xf32, #tpu.memory_space<vmem>>, vector<1x128xf32>
    %17 = arith.addf %15, %16 : vector<1x128xf32>
    %c0_13 = arith.constant 0 : index
    %c0_14 = arith.constant 0 : index
    %18 = vector.load %arg5[%c0_13, %c0_14] : memref<1x128xf32, #tpu.memory_space<vmem>>, vector<1x128xf32>
    tpu.vector_store %arg5[%c0_13, %c0_14], %17 {strides = array<i32>} : memref<1x128xf32, #tpu.memory_space<vmem>>, vector<1x128xf32>,
    return
  }
}

</mosaic_0001>

<bundles_post_ra>
// kernel: squeeze.2
= control target key start
LH: loop header
LB: loop body
LE: loop exit
PB: predicated region body
PF: predicated region fallthrough
CT: control target
= control target key end

     0   :  { %2 = vsyncpa [#allocation1], 0  ;;  %s238_s6 = smov [#allocation0]   ;;  %s287_s0 = inlined_call_operand.hbm [shape: f32[1,4,16,16], index: 0, kind: input, shape index: {}]   ;;  %s288_s1 = inlined_call_operand.vmem [shape: f32[4,256], index: 1, kind: output, shape index: {}]  }
   0x1   :  { %s7_s7 = sshll.u32 %s238_s6, 4  ;;  %s8_s7 = int_to_ptr.vmem [resolvable:$true] %s7_s7 }
   0x2   :  { %s224_s8 = scalar_lea.vmem %s8_s7, 1024  ;;  %p229_p1 = scmp.lt.s32.totalorder %s8_s7, %s8_s7 }
   0x3   :  { %p225_p0 = scmp.ne.s32.totalorder %s8_s7, %s224_s8  ;;  %p230_p2 = scmp.lt.s32.totalorder %s224_s8, %s224_s8 }
   0x5   :  { %p231_p3 = por %p230_p2, %p229_p1 }
   0x7   :  { %p232_p4 = pnand %p231_p3, %p225_p0 }
   0x9   :  { %235 = shalt.err (!%p232_p4)
}
   0xa   :  { %10 = dma.hbm_to_vmem [thread:$0]  %s287_s0, 1024, %s8_s7, [#allocation1]  }
   0xb   :  { %236 = dma.done.wait [#allocation1], 1024  }
   0xc   :  { %237 = vsyncadd [#allocation1], 4294966272  ;;  %s25_s0 = smov 3  ;;  %s28_s11 = smov 12  ;;  %vm30_vm0 = vcmask 1043458   ;;  %vm35_vm1 = vcmask 1045508  }
   0xd   :  { %s33_s12 = smov 48  ;;  %s38_s13 = smov 192  ;;  %vm40_vm2 = vcmask 1047558   ;;  %v26_v0 = vld [vmem:[#allocation0 + $0x7] ss:$16 sm:%s25_s0]   ;;  %vm14_vm3 = vcmask 1047556  }
   0xe   :  { %s73_s14 = smov 3  ;;  %s76_s15 = smov 12  ;;  %v29_v1 = vld [vmem:[#allocation0 + $0x7] ss:$16 sm:%s28_s11]   ;;  %v34_v2 = vld [vmem:[#allocation0 - $0x31] ss:$16 sm:%s33_s12]  }
   0xf   :  { %s81_s16 = smov 48  ;;  %s86_s17 = smov 192  ;;  %v31_v3 = vsel %vm30_vm0, %v29_v1, %v26_v0  ;;  %v39_v4 = vld [vmem:[#allocation0 - $0x31] ss:$16 sm:%s38_s13]   ;;  %v74_v5 = vld [vmem:[#allocation0 + $0x5] ss:$16 sm:%s73_s14]  }
  0x10   :  { %s49_s18 = smov 3  ;;  %s52_s19 = smov 12  ;;  %v77_v6 = vld [vmem:[#allocation0 + $0x5] ss:$16 sm:%s76_s15]   ;;  %v36_v7 = vsel %vm35_vm1, %v34_v2, %v31_v3  ;;  %v82_v9 = vld [vmem:[#allocation0 - $0x33] ss:$16 sm:%s81_s16]  }
  0x11   :  { %s57_s20 = smov 48  ;;  %s62_s21 = smov 192  ;;  %v79_v8 = vsel %vm30_vm0, %v77_v6, %v74_v5  ;;  %v87_v10 = vld [vmem:[#allocation0 - $0x33] ss:$16 sm:%s86_s17]   ;;  %v50_v11 = vld [vmem:[#allocation0 + $0x6] ss:$16 sm:%s49_s18]   ;;  %v41_v12 = vsel %vm40_vm2, %v39_v4, %v36_v7 }
  0x12   :  { %v84_v13 = vsel %vm35_vm1, %v82_v9, %v79_v8  ;;  %v53_v14 = vld [vmem:[#allocation0 + $0x6] ss:$16 sm:%s52_s19]   ;;  %v58_v15 = vld [vmem:[#allocation0 - $0x32] ss:$16 sm:%s57_s20]   ;;  %s239_s22 = smov 112   ;;  %s97_s23 = smov 3 }
  0x13   :  { %v63_v16 = vld [vmem:[#allocation0 - $0x32] ss:$16 sm:%s62_s21]   ;;  %42 = vrot.lane.b32.xlu0 %v41_v12, %s239_s22  ;;  %v89_v17 = vsel %vm40_vm2, %v87_v10, %v84_v13  ;;  %v55_v18 = vsel %vm30_vm0, %v53_v14, %v50_v11  ;;  %s240_s24 = smov 80   ;;  %v98_v20 = vld [vmem:[#allocation0 + $0x4] ss:$16 sm:%s97_s23]   ;;  %s100_s25 = smov 12 }
  0x14   :  { %90 = vrot.lane.b32.xlu1 %v89_v17, %s240_s24  ;;  %v60_v19 = vsel %vm35_vm1, %v58_v15, %v55_v18  ;;  %s105_s26 = smov 48  ;;  %v101_v22 = vld [vmem:[#allocation0 + $0x4] ss:$16 sm:%s100_s25]   ;;  %s110_s27 = smov 192  ;;  %vm16_vm4 = vcmask 130048   ;;  %vm44_vm5 = vcmask 1048448  }
  0x15   :  { %v65_v21 = vsel %vm40_vm2, %v63_v16, %v60_v19  ;;  %v106_v23 = vld [vmem:[#allocation0 - $0x34] ss:$16 sm:%s105_s26]   ;;  %v103_v24 = vsel %vm30_vm0, %v101_v22, %v98_v20  ;;  %s121_s28 = smov 3  ;;  %s124_s29 = smov 12  ;;  %vm68_vm6 = vcmask 917248   ;;  %vm92_vm7 = vcmask 786048  }
  0x16   :  { %v111_v25 = vld [vmem:[#allocation0 - $0x34] ss:$16 sm:%s110_s27]   ;;  %s241_s30 = smov 96   ;;  %v108_v26 = vsel %vm35_vm1, %v106_v23, %v103_v24  ;;  %v122_v27 = vld [vmem:[#allocation0 + $0x3] ss:$16 sm:%s121_s28]   ;;  %s129_s2 = smov 48 }
  0x17   :  { %66 = vrot.lane.b32.xlu0 %v65_v21, %s241_s30  ;;  %v125_v28 = vld [vmem:[#allocation0 + $0x3] ss:$16 sm:%s124_s29]   ;;  %s134_s3 = smov 192  ;;  %v113_v29 = vsel %vm40_vm2, %v111_v25, %v108_v26  ;;  %v130_v31 = vld [vmem:[#allocation0 - $0x35] ss:$16 sm:%s129_s2]   ;;  %s145_s4 = smov 3 }
  0x18   :  { %v127_v30 = vsel %vm30_vm0, %v125_v28, %v122_v27  ;;  %v135_v32 = vld [vmem:[#allocation0 - $0x35] ss:$16 sm:%s134_s3]   ;;  %s242_s5 = smov 64   ;;  %v146_v34 = vld [vmem:[#allocation0 + $0x2] ss:$16 sm:%s145_s4]   ;;  %s148_s6 = smov 12 }
  0x19   :  { %114 = vrot.lane.b32.xlu1 %v113_v29, %s242_s5  ;;  %v132_v33 = vsel %vm35_vm1, %v130_v31, %v127_v30  ;;  %s153_s7 = smov 48  ;;  %v149_v36 = vld [vmem:[#allocation0 + $0x2] ss:$16 sm:%s148_s6]   ;;  %s158_s8 = smov 192  ;;  %vm116_vm8 = vcmask 654848   ;;  %vm140_vm9 = vcmask 523648  }
  0x1a   :  { %v137_v35 = vsel %vm40_vm2, %v135_v32, %v132_v33  ;;  %v154_v37 = vld [vmem:[#allocation0 - $0x36] ss:$16 sm:%s153_s7]   ;;  %v12_v38 = vld [vmem:[#allocation0] ss:$8 sm:$0xf]   ;;  %s243_s9 = smov 48   ;;  %v151_v39 = vsel %vm30_vm0, %v149_v36, %v146_v34 }
  0x1b   :  { %138 = vrot.lane.b32.xlu0 %v137_v35, %s243_s9  ;;  %v159_v40 = vld [vmem:[#allocation0 - $0x36] ss:$16 sm:%s158_s8]   ;;  %s169_s10 = smov 3  ;;  %s172_s0 = smov 12  ;;  %v156_v41 = vsel %vm35_vm1, %v154_v37, %v151_v39  ;;  %vm164_vm10 = vcmask 392448   ;;  %vm188_vm11 = vcmask 261248  }
  0x1c   :  { %v170_v42 = vld [vmem:[#allocation0 + $0x1] ss:$16 sm:%s169_s10]   ;;  %s177_s11 = smov 48  ;;  %s182_s12 = smov 192  ;;  %v161_v44 = vsel %vm40_vm2, %v159_v40, %v156_v41 }
  0x1d   :  { %v173_v43 = vld [vmem:[#allocation0 + $0x1] ss:$16 sm:%s172_s0]   ;;  %v178_v46 = vld [vmem:[#allocation0 - $0x37] ss:$16 sm:%s177_s11]   ;;  %s244_s13 = smov 32   ;;  %s245_s14 = smov 16  }
  0x1e   :  { %v175_v45 = vsel %vm30_vm0, %v173_v43, %v170_v42  ;;  %v183_v47 = vld [vmem:[#allocation0 - $0x37] ss:$16 sm:%s182_s12]   ;;  %162 = vrot.lane.b32.xlu1 %v161_v44, %s244_s13  ;;  %v13_v49 = vld [vmem:[#allocation0] ss:$8 sm:$0xf0]  }
  0x1f   :  { %v180_v48 = vsel %vm35_vm1, %v178_v46, %v175_v45  ;;  %v15_v51 = vsel %vm14_vm3, %v13_v49, %v12_v38 }
  0x20   :  { %v185_v50 = vsel %vm40_vm2, %v183_v47, %v180_v48  ;;  %17 = vst.msk [vmem:[#allocation2] ss:$8 sm:$0x3] %vm16_vm4, %v15_v51   ;;  %19 = vst.msk [vmem:[#allocation2 - $0xf] ss:$8 sm:$0xc] %vm16_vm4, %v15_v51  }
  0x21   :  { %186 = vrot.lane.b32.xlu0 %v185_v50, %s245_s14  ;;  %21 = vst.msk [vmem:[#allocation2 - $0x1e] ss:$8 sm:$0x30] %vm16_vm4, %v15_v51   ;;  %23 = vst.msk [vmem:[#allocation2 - $0x2d] ss:$8 sm:$0xc0] %vm16_vm4, %v15_v51  }
  0x85   :  { %v43_v52 = vpop.permute.xlu0 %42  }
  0x86   :  { %v91_v53 = vpop.permute.xlu1 %90   ;;  %45 = vst.msk [vmem:[#allocation2] sm:$0xf] %vm44_vm5, %v43_v52   ;;  %47 = vst.msk [vmem:[#allocation2 + $0x4] sm:$0xf0] %vm44_vm5, %v43_v52  }
  0x89   :  { %v67_v54 = vpop.permute.xlu0 %66  }
  0x8a   :  { %69 = vst.msk [vmem:[#allocation2] sm:$0xf] %vm68_vm6, %v67_v54   ;;  %71 = vst.msk [vmem:[#allocation2 + $0x4] sm:$0xf0] %vm68_vm6, %v67_v54  }
  0x8b   :  { %93 = vst.msk [vmem:[#allocation2] sm:$0xf] %vm92_vm7, %v91_v53   ;;  %95 = vst.msk [vmem:[#allocation2 + $0x4] sm:$0xf0] %vm92_vm7, %v91_v53   ;;  %v115_v55 = vpop.permute.xlu1 %114  }
  0x8c   :  { %117 = vst.msk [vmem:[#allocation2] sm:$0xf] %vm116_vm8, %v115_v55   ;;  %119 = vst.msk [vmem:[#allocation2 + $0x4] sm:$0xf0] %vm116_vm8, %v115_v55  }
  0x8d   :  { %v139_v56 = vpop.permute.xlu0 %138  }
  0x8e   :  { %141 = vst.msk [vmem:[#allocation2] sm:$0xf] %vm140_vm9, %v139_v56   ;;  %143 = vst.msk [vmem:[#allocation2 + $0x4] sm:$0xf0] %vm140_vm9, %v139_v56  }
  0x90   :  { %v163_v57 = vpop.permute.xlu1 %162  }
  0x91   :  { %165 = vst.msk [vmem:[#allocation2] sm:$0xf] %vm164_vm10, %v163_v57   ;;  %167 = vst.msk [vmem:[#allocation2 + $0x4] sm:$0xf0] %vm164_vm10, %v163_v57  }
  0x93   :  { %v187_v58 = vpop.permute.xlu0 %186  }
  0x94   :  { %189 = vst.msk [vmem:[#allocation2] sm:$0xf] %vm188_vm11, %v187_v58   ;;  %191 = vst.msk [vmem:[#allocation2 + $0x4] sm:$0xf0] %vm188_vm11, %v187_v58  }
  0x9b   :  { %v196_v59 = vld [vmem:[#allocation2] sm:$0xf]  ;;  %v201_v60 = vld [vmem:[#allocation2 + $0x8] sm:$0xf] }
  0x9c   :  { %199 = vst [vmem:[%s288_s1] sm:$0xf] %v196_v59  ;;  %207 = vst [vmem:[%s288_s1 + $0x4] sm:$0xf] %v201_v60 }
  0x9d   :  { %206 = vsyncpa [#allocation1], 1 }

// kernel: _run.1
= control target key start
LH: loop header
LB: loop body
LE: loop exit
PB: predicated region body
PF: predicated region fallthrough
CT: control target
= control target key end

     0   :  { %10 = vsyncpa [#allocation3], 0  ;;  %s230_s18 = smov [#allocation2]   ;;  %s286_s0 = inlined_call_operand.vmem [shape: f32[4,256], index: 0, kind: input, shape index: {}]   ;;  %s287_s1 = inlined_call_operand.vmem [shape: f32[4,128], index: 1, kind: input, shape index: {}]   ;;  %s288_s2 = inlined_call_operand.vmem [shape: f32[1,128], index: 2, kind: input, shape index: {}]   ;;  %s289_s3 = inlined_call_operand.hbm [shape: f32[128,128], index: 3, kind: input, shape index: {}]   ;;  %s290_s4 = inlined_call_operand.vmem [shape: f32[1,128], index: 4, kind: input, shape index: {}]   ;;  %s291_s5 = inlined_call_operand.vmem [shape: f32[1,128], index: 5, kind: output, shape index: {}]  }
   0x1   :  { %s22_s19 = sshll.u32 %s230_s18, 4  ;;  %s23_s19 = int_to_ptr.vmem [resolvable:$true] %s22_s19 }
   0x2   :  { %s216_s20 = scalar_lea.vmem %s23_s19, 2048  ;;  %p221_p1 = scmp.lt.s32.totalorder %s23_s19, %s23_s19 }
   0x3   :  { %p217_p0 = scmp.ne.s32.totalorder %s23_s19, %s216_s20  ;;  %p222_p2 = scmp.lt.s32.totalorder %s216_s20, %s216_s20 }
   0x5   :  { %p223_p3 = por %p222_p2, %p221_p1 }
   0x7   :  { %p224_p4 = pnand %p223_p3, %p217_p0 }
   0x9   :  { %227 = shalt.err (!%p224_p4)
}
   0xa   :  { %s231_s21 = smov 128   ;;  %s232_s22 = smov 8  }
   0xb   :  { %28 = dma.hbm_to_vmem [thread:$0]  %s289_s3, 2048, %s23_s19, [#allocation3], %s231_s21, %s231_s21, %s232_s22  }
   0xc   :  { %228 = dma.done.wait [#allocation3], 2048  }
   0xd   :  { %229 = vsyncadd [#allocation3], 4294965248  ;;  %v233_v0 = vmov 0.0   ;;  %vm38_vm0 = vcmask 1043456   ;;  %v34_v1 = vld [vmem:[%s286_s0] sm:$0xff]  ;;  %v72_v2 = vld [vmem:[#allocation2 + $0x78] sm:$0xff] }
   0xe   :  { %167 = vmatprep.subr.mxu0 %v233_v0  ;;  %v71_v3 = vld [vmem:[#allocation2 + $0x70] sm:$0xff]  ;;  %v36_v4 = vcombine.high %v34_v1, %v34_v1  ;;  %v39_v5 = vsel %vm38_vm0, %v34_v1, 0.0  ;;  %v70_v6 = vld [vmem:[#allocation2 + $0x68] sm:$0xff]  ;;  %v69_v9 = vld [vmem:[#allocation2 + $0x60] sm:$0xff]  ;;  %vm234_vm1 = vmmov 0  }
   0xf   :  { %168 = vmatpush3.msra.mxu0 %v72_v2  ;;  %v68_v10 = vld [vmem:[#allocation2 + $0x58] sm:$0xff]  ;;  %v67_v11 = vld [vmem:[#allocation2 + $0x50] sm:$0xff]  ;;  %v66_v12 = vld [vmem:[#allocation2 + $0x48] sm:$0xff]  ;;  %199 = vmatprep.mubr.msk.f32.mxu0 %vm234_vm1, %v233_v0 }
  0x10   :  { %169 = vmatprep.subr.mxu0 %v233_v0  ;;  %v40_v7 = vsel %vm38_vm0, %v36_v4, 0.0  ;;  %v65_v13 = vld [vmem:[#allocation2 + $0x40] sm:$0xff]  ;;  %v64_v14 = vld [vmem:[#allocation2 + $0x38] sm:$0xff]  ;;  %v63_v15 = vld [vmem:[#allocation2 + $0x30] sm:$0xff] }
  0x11   :  { %170 = vmatpush3.msra.mxu0 %v71_v3  ;;  %v41_v8 = vadd.f32 %v40_v7, %v39_v5  ;;  %v62_v16 = vld [vmem:[#allocation2 + $0x28] sm:$0xff]  ;;  %v61_v17 = vld [vmem:[#allocation2 + $0x20] sm:$0xff]  ;;  %v60_v18 = vld [vmem:[#allocation2 + $0x18] sm:$0xff] }
  0x12   :  { %171 = vmatprep.subr.mxu0 %v233_v0  ;;  %v59_v19 = vld [vmem:[#allocation2 + $0x10] sm:$0xff]  ;;  %v58_v20 = vld [vmem:[#allocation2 + $0x8] sm:$0xff]  ;;  %v57_v21 = vld [vmem:[#allocation2] sm:$0xff] }
  0x13   :  { %172 = vmatpush3.msra.mxu0 %v70_v6  ;;  %42 = vadd.xlane.f32.xlu0 %v41_v8  ;;  %v45_v23 = vld [vmem:[%s287_s1] sm:$0xf] }
  0x14   :  { %173 = vmatprep.subr.mxu0 %v233_v0  ;;  %v54_v32 = vld [vmem:[%s288_s2] sm:$0x1] }
  0x15   :  { %174 = vmatpush3.msra.mxu0 %v69_v9  ;;  %v73_v36 = vld [vmem:[%s290_s4] sm:$0x1] }
  0x16   :  { %175 = vmatprep.subr.mxu0 %v233_v0 }
  0x17   :  { %176 = vmatpush3.msra.mxu0 %v68_v10 }
  0x18   :  { %177 = vmatprep.subr.mxu0 %v233_v0 }
  0x19   :  { %178 = vmatpush3.msra.mxu0 %v67_v11 }
  0x1a   :  { %179 = vmatprep.subr.mxu0 %v233_v0 }
  0x1b   :  { %180 = vmatpush3.msra.mxu0 %v66_v12 }
  0x1c   :  { %181 = vmatprep.subr.mxu0 %v233_v0 }
  0x1d   :  { %182 = vmatpush3.msra.mxu0 %v65_v13 }
  0x1e   :  { %183 = vmatprep.subr.mxu0 %v233_v0 }
  0x1f   :  { %184 = vmatpush3.msra.mxu0 %v64_v14 }
  0x20   :  { %185 = vmatprep.subr.mxu0 %v233_v0 }
  0x21   :  { %186 = vmatpush3.msra.mxu0 %v63_v15 }
  0x22   :  { %187 = vmatprep.subr.mxu0 %v233_v0 }
  0x23   :  { %188 = vmatpush3.msra.mxu0 %v62_v16 }
  0x24   :  { %189 = vmatprep.subr.mxu0 %v233_v0 }
  0x25   :  { %190 = vmatpush3.msra.mxu0 %v61_v17 }
  0x26   :  { %191 = vmatprep.subr.mxu0 %v233_v0 }
  0x27   :  { %192 = vmatpush3.msra.mxu0 %v60_v18 }
  0x28   :  { %193 = vmatprep.subr.mxu0 %v233_v0 }
  0x29   :  { %194 = vmatpush3.msra.mxu0 %v59_v19 }
  0x2a   :  { %195 = vmatprep.subr.mxu0 %v233_v0 }
  0x2b   :  { %196 = vmatpush3.msra.mxu0 %v58_v20 }
  0x2c   :  { %197 = vmatprep.subr.mxu0 %v233_v0 }
  0x2d   :  { %198 = vmatpush3.msra.mxu0 %v57_v21 }
  0x9c   :  { %v43_v22 = vpop.xlane.xlu0 %42 }
  0x9d   :  { %v44_v24 = vmul.f32 0.00390625, %v43_v22 }
  0x9f   :  { %v46_v25 = vmul.f32 %v45_v23, %v44_v24 }
  0xa1   :  { %v47_v26 = vsel %vm38_vm0, %v46_v25, 0.0 }
  0xa2   :  { %v48_v27 = vrot.slane %v47_v26, 4 }
  0xa4   :  { %v49_v28 = vadd.f32 %v48_v27, %v47_v26 }
  0xa6   :  { %v50_v29 = vrot.slane %v49_v28, 2 }
  0xa8   :  { %v51_v30 = vadd.f32 %v50_v29, %v49_v28 }
  0xaa   :  { %v52_v31 = vrot.slane %v51_v30, 1 }
  0xac   :  { %v53_v33 = vadd.f32 %v52_v31, %v51_v30 }
  0xae   :  { %v55_v34 = vadd.f32 %v54_v32, %v53_v33 }
  0xb0   :  { %v56_v35 = vmax.f32 %v55_v34, 0.0 }
  0xb2   :  { %200 = vmatmul.mubr.f32.vlgmr.msra.gmra.mxu0 %v56_v35 }
 0x172   :  { %v140_v37 = vpop.f32.mrf.mxu0 }
 0x173   :  { %v141_v38 = vadd.f32 %v140_v37, %v73_v36 }
 0x174   :  { %v201_v39 = vpop.f32.mrf.mxu0 }
 0x175   :  { %144 = vst [vmem:[%s291_s5] sm:$0x1] %v141_v38 }
 0x176   :  { %149 = vsyncpa [#allocation3], 1 }

</bundles_post_ra>
